<compile_context>
chip_gen: v7x
topology: tpu7x:2x2x1
jax: 0.10.0
libtpu: 0.0.40
codegen_flags: <defaults>
</compile_context>

<pallas_src>
import functools

import numpy as np
import jax
import jax.numpy as jnp
from jax.experimental import pallas as pl
from jax.experimental.pallas import tpu as pltpu


def _dkt_loss_kernel(pred_ref, bc_ref, bi_ref, p_ref, a_ref, stats_ref, *, max_step):
    T = max_step
    pred = pred_ref[...]                          # (bt, T, Q) f32
    bc = bc_ref[...].astype(jnp.float32)          # answered-correct one-hot
    bi = bi_ref[...].astype(jnp.float32)          # answered-incorrect one-hot
    delta = bc + bi                               # attempted-question one-hot

    # p[b, t] = <pred[b, t], delta[b, t+1]>  ==  diag(pred[:T-1] @ delta[1:].T)
    p = jnp.sum(pred[:, :T - 1, :] * delta[:, 1:, :], axis=-1)        # (bt, T-1)

    # a = floor((sum(bc - bi, axis=-1) + 1) / 2)[1:]   (torch float floor-division)
    diff = jnp.sum(bc - bi, axis=-1)                                   # (bt, T)
    a = jnp.floor((diff[:, 1:] + 1.0) * 0.5)                           # (bt, T-1)

    # first index with p > 0 per student (torch truncation loop); start = 0 when none
    idx = jax.lax.broadcasted_iota(jnp.int32, p.shape, 1).astype(jnp.float32)
    sentinel = jnp.float32(T - 1)
    first = jnp.min(jnp.where(p > 0, idx, sentinel), axis=1, keepdims=True)   # (bt, 1)
    start = jnp.where(first < sentinel, first, 0.0)                           # (bt, 1)
    mask = (idx >= start).astype(jnp.float32)

    # BCELoss (mean) with PyTorch-style clamp of the log terms at -100, masked to [start:]
    log_p = jnp.maximum(jnp.log(p), -100.0)
    log_1mp = jnp.maximum(jnp.log(1.0 - p), -100.0)
    bce = -(a * log_p + (1.0 - a) * log_1mp)
    cnt = jnp.sum(mask, axis=1, keepdims=True)                                # >= 1 always
    loss = jnp.sum(bce * mask, axis=1, keepdims=True) / cnt                   # (bt, 1)

    p_ref[...] = p
    a_ref[...] = a
    # pack per-student scalars lane-wise: column 0 = loss, column 1 = truncation start
    col = jax.lax.broadcasted_iota(jnp.int32, (p.shape[0], 2), 1)
    stats_ref[...] = jnp.where(col == 0, loss, start)


def _round_up(x, m):
    return ((x + m - 1) // m) * m


def _pick_b_tile(B, T, Q):
    # Double-buffered input blocks: pred f32 (4B) + bc/bi bf16 (2B + 2B) per element.
    # Budget ~24 MiB so the pipeline fits v7x's 64 MiB VMEM (and v5e/v6e) with headroom.
    budget = 24 * 1024 * 1024
    per_student = 2 * (4 + 2 + 2) * T * Q
    cap = max(8, min(256, (budget // max(per_student, 1)) // 8 * 8))
    # TODO(synk): tile/pad Q (multiple of 128) for very large num_of_questions.
    return int(min(cap, _round_up(B, 8)))


def dkt_loss(pred, batch_onehot, num_of_questions, max_step, b_tile=None):
    B, T, Q = pred.shape
    assert T == max_step and Q == num_of_questions
    assert batch_onehot.shape == (B, T, 2 * Q)

    # Split the [correct | incorrect] halves on a non-minor axis (no in-kernel lane-offset
    # slice) and narrow the {0,1} one-hots to bf16 (exact) to cut kernel HBM traffic.
    bb = batch_onehot.reshape(B, T, 2, Q)
    bc = bb[:, :, 0, :].astype(jnp.bfloat16)
    bi = bb[:, :, 1, :].astype(jnp.bfloat16)
    pred = pred.astype(jnp.float32)

    if b_tile is None:
        b_tile = _pick_b_tile(B, T, Q)
    nb = pl.cdiv(B, b_tile)
    B_pad = nb * b_tile
    if B_pad != B:
        padn = B_pad - B
        pred = jnp.pad(pred, ((0, padn), (0, 0), (0, 0)))
        bc = jnp.pad(bc, ((0, padn), (0, 0), (0, 0)))
        bi = jnp.pad(bi, ((0, padn), (0, 0), (0, 0)))
        # padded students produce p == 0, a == 0 -> loss exactly 0; sliced off below anyway

    kernel = functools.partial(_dkt_loss_kernel, max_step=T)
    p_all, a_all, stats = pl.pallas_call(
        kernel,
        grid=(nb,),
        in_specs=[
            pl.BlockSpec((b_tile, T, Q), lambda b: (b, 0, 0)),
            pl.BlockSpec((b_tile, T, Q), lambda b: (b, 0, 0)),
            pl.BlockSpec((b_tile, T, Q), lambda b: (b, 0, 0)),
        ],
        out_specs=[
            pl.BlockSpec((b_tile, T - 1), lambda b: (b, 0)),
            pl.BlockSpec((b_tile, T - 1), lambda b: (b, 0)),
            pl.BlockSpec((b_tile, 2), lambda b: (b, 0)),
        ],
        out_shape=[
            jax.ShapeDtypeStruct((B_pad, T - 1), jnp.float32),
            jax.ShapeDtypeStruct((B_pad, T - 1), jnp.float32),
            jax.ShapeDtypeStruct((B_pad, 2), jnp.float32),
        ],
        compiler_params=pltpu.CompilerParams(
            dimension_semantics=("parallel",),
            vmem_limit_bytes=48 * 1024 * 1024,
        ),
    )(pred, bc, bi)

    loss_per = stats[:B, 0]
    starts = stats[:B, 1].astype(jnp.int32)
    total_loss = jnp.sum(loss_per)          # torch sums the per-student BCE means
    return total_loss, p_all[:B], a_all[:B], starts


def _ref_forward(pred, batch_oh, Q, T):
    """Pure-numpy replica of the torch forward for verification."""
    total = 0.0
    preds, gts = [], []
    for s in range(pred.shape[0]):
        bc = batch_oh[s, :, :Q]
        bi = batch_oh[s, :, Q:2 * Q]
        delta = bc + bi
        p = (pred[s, :T - 1] * delta[1:]).sum(axis=1)
        a = np.floor(((bc - bi).sum(axis=1) + 1.0) / 2.0)[1:]
        start = 0
        for i in range(len(p)):
            if p[i] > 0:
                start = i
                break
        pp, aa = p[start:], a[start:]
        with np.errstate(divide="ignore"):
            lp = np.maximum(np.log(pp), -100.0)
            l1p = np.maximum(np.log(1.0 - pp), -100.0)
        total += float((-(aa * lp + (1.0 - aa) * l1p)).mean())
        preds.append(pp)
        gts.append(aa)
    return total, np.concatenate(preds), np.concatenate(gts)


if __name__ == "__main__":
    B, T, Q = 2, 8, 16          # batch, max_step, num_of_questions
    key = jax.random.PRNGKey(0)
    k1, k2, k3 = jax.random.split(key, 3)

    pred = jax.nn.sigmoid(jax.random.normal(k1, (B, T, Q), dtype=jnp.float32))
    qid = jax.random.randint(k2, (B, T), 0, Q)
    correct = jax.random.bernoulli(k3, 0.6, (B, T)).astype(jnp.float32)
    oh_q = jax.nn.one_hot(qid, Q, dtype=jnp.float32)
    bc0 = oh_q * correct[..., None]
    bi0 = oh_q * (1.0 - correct[..., None])
    batch_oh = jnp.concatenate([bc0, bi0], axis=-1)
    # zero out step 1 for student 0 so the torch truncation branch (p[0] == 0 -> skip) is hit
    batch_oh = batch_oh.at[0, 1, :].set(0.0)

    total_loss, p_all, a_all, starts = jax.block_until_ready(
        dkt_loss(pred, batch_oh, Q, T))

    # ragged (data-dependent length) concatenation -> host side; dynamic shapes not
    # expressible inside the kernel
    p_np, a_np, s_np = np.asarray(p_all), np.asarray(a_all), np.asarray(starts)
    prediction = np.concatenate([p_np[s, int(s_np[s]):] for s in range(B)])
    ground_truth = np.concatenate([a_np[s, int(s_np[s]):] for s in range(B)])

    ref_loss, ref_pred, ref_gt = _ref_forward(np.asarray(pred), np.asarray(batch_oh), Q, T)
    assert np.allclose(float(total_loss), ref_loss, rtol=1e-5, atol=1e-5)
    assert np.allclose(prediction, ref_pred, rtol=1e-5, atol=1e-5)
    assert np.allclose(ground_truth, ref_gt, rtol=1e-5, atol=1e-5)

    print("KERNEL_OK")
</pallas_src>

<mosaic_0001>
module attributes {stable_mosaic.version = 11 : i64} {
  func.func @_dkt_loss_kernel(%arg0: i32, %arg1: memref<8x8x16xf32, #tpu.memory_space<vmem>>, %arg2: memref<8x8x16xbf16, #tpu.memory_space<vmem>>, %arg3: memref<8x8x16xbf16, #tpu.memory_space<vmem>>, %arg4: memref<8x7xf32, #tpu.memory_space<vmem>>, %arg5: memref<8x7xf32, #tpu.memory_space<vmem>>, %arg6: memref<8x2xf32, #tpu.memory_space<vmem>>) attributes {dimension_semantics = [#tpu.dimension_semantics<parallel>], iteration_bounds = array<i64: 1>, scalar_prefetch = 0 : i64, scratch_operands = 0 : i64, tpu.core_type = #tpu.core_type<tc>, window_params = [{transform_indices = @transform_0, window_bounds = array<i64: 8, 8, 16>}, {transform_indices = @transform_1, window_bounds = array<i64: 8, 8, 16>}, {transform_indices = @transform_2, window_bounds = array<i64: 8, 8, 16>}, {transform_indices = @transform_3, window_bounds = array<i64: 8, 7>}, {transform_indices = @transform_4, window_bounds = array<i64: 8, 7>}, {transform_indices = @transform_5, window_bounds = array<i64: 8, 2>}]} {
    %c0 = arith.constant 0 : index
    %c0_0 = arith.constant 0 : index
    %c0_1 = arith.constant 0 : index
    %0 = vector.load %arg1[%c0, %c0_0, %c0_1] : memref<8x8x16xf32, #tpu.memory_space<vmem>>, vector<8x8x16xf32>
    %c0_2 = arith.constant 0 : index
    %c0_3 = arith.constant 0 : index
    %c0_4 = arith.constant 0 : index
    %1 = vector.load %arg2[%c0_2, %c0_3, %c0_4] : memref<8x8x16xbf16, #tpu.memory_space<vmem>>, vector<8x8x16xbf16>
    %2 = arith.extf %1 : vector<8x8x16xbf16> to vector<8x8x16xf32>
    %c0_5 = arith.constant 0 : index
    %c0_6 = arith.constant 0 : index
    %c0_7 = arith.constant 0 : index
    %3 = vector.load %arg3[%c0_5, %c0_6, %c0_7] : memref<8x8x16xbf16, #tpu.memory_space<vmem>>, vector<8x8x16xbf16>
    %4 = arith.extf %3 : vector<8x8x16xbf16> to vector<8x8x16xf32>
    %5 = arith.addf %2, %4 : vector<8x8x16xf32>
    %6 = vector.extract_strided_slice %0 {offsets = [0, 0, 0], sizes = [8, 7, 16], strides = [1, 1, 1]} : vector<8x8x16xf32> to vector<8x7x16xf32>
    %7 = vector.extract_strided_slice %5 {offsets = [0, 1, 0], sizes = [8, 7, 16], strides = [1, 1, 1]} : vector<8x8x16xf32> to vector<8x7x16xf32>
    %8 = arith.mulf %6, %7 : vector<8x7x16xf32>
    %cst = arith.constant dense<0.000000e+00> : vector<8x7xf32>
    %9 = vector.multi_reduction <add>, %8, %cst [2] : vector<8x7x16xf32> to vector<8x7xf32>
    %10 = arith.subf %2, %4 : vector<8x8x16xf32>
    %cst_8 = arith.constant dense<0.000000e+00> : vector<8x8xf32>
    %11 = vector.multi_reduction <add>, %10, %cst_8 [2] : vector<8x8x16xf32> to vector<8x8xf32>
    %12 = vector.extract_strided_slice %11 {offsets = [0, 1], sizes = [8, 7], strides = [1, 1]} : vector<8x8xf32> to vector<8x7xf32>
    %cst_9 = arith.constant 1.000000e+00 : f32
    %13 = vector.broadcast %cst_9 : f32 to vector<8x7xf32>
    %14 = arith.addf %12, %13 : vector<8x7xf32>
    %cst_10 = arith.constant 5.000000e-01 : f32
    %15 = vector.broadcast %cst_10 : f32 to vector<8x7xf32>
    %16 = arith.mulf %14, %15 : vector<8x7xf32>
    %17 = math.floor %16 : vector<8x7xf32>
    %18 = tpu.iota {dimensions = array<i32: 1>} : vector<8x7xi32>
    %19 = arith.sitofp %18 : vector<8x7xi32> to vector<8x7xf32>
    %cst_11 = arith.constant 0.000000e+00 : f32
    %20 = vector.broadcast %cst_11 : f32 to vector<8x7xf32>
    %21 = arith.cmpf ogt, %9, %20 : vector<8x7xf32>
    %cst_12 = arith.constant 7.000000e+00 : f32
    %22 = vector.broadcast %cst_12 : f32 to vector<8x7xf32>
    %23 = arith.select %21, %19, %22 : vector<8x7xi1>, vector<8x7xf32>
    %cst_13 = arith.constant dense<0x7F800000> : vector<8xf32>
    %24 = vector.multi_reduction <minimumf>, %23, %cst_13 [1] : vector<8x7xf32> to vector<8xf32>
    %25 = vector.shape_cast %24 : vector<8xf32> to vector<8x1xf32>
    %cst_14 = arith.constant 7.000000e+00 : f32
    %26 = vector.broadcast %cst_14 : f32 to vector<8x1xf32>
    %27 = arith.cmpf olt, %25, %26 : vector<8x1xf32>
    %cst_15 = arith.constant 0.000000e+00 : f32
    %28 = vector.broadcast %cst_15 : f32 to vector<8x1xf32>
    %29 = arith.select %27, %25, %28 : vector<8x1xi1>, vector<8x1xf32>
    %30 = vector.broadcast %29 : vector<8x1xf32> to vector<8x7xf32>
    %31 = arith.cmpf oge, %19, %30 : vector<8x7xf32>
    %32 = arith.extui %31 : vector<8x7xi1> to vector<8x7xi32>
    %33 = arith.sitofp %32 : vector<8x7xi32> to vector<8x7xf32>
    %34 = math.log %9 : vector<8x7xf32>
    %cst_16 = arith.constant -1.000000e+02 : f32
    %35 = vector.broadcast %cst_16 : f32 to vector<8x7xf32>
    %36 = arith.maximumf %34, %35 : vector<8x7xf32>
    %cst_17 = arith.constant 1.000000e+00 : f32
    %37 = vector.broadcast %cst_17 : f32 to vector<8x7xf32>
    %38 = arith.subf %37, %9 : vector<8x7xf32>
    %39 = math.log %38 : vector<8x7xf32>
    %cst_18 = arith.constant -1.000000e+02 : f32
    %40 = vector.broadcast %cst_18 : f32 to vector<8x7xf32>
    %41 = arith.maximumf %39, %40 : vector<8x7xf32>
    %42 = arith.mulf %17, %36 : vector<8x7xf32>
    %cst_19 = arith.constant 1.000000e+00 : f32
    %43 = vector.broadcast %cst_19 : f32 to vector<8x7xf32>
    %44 = arith.subf %43, %17 : vector<8x7xf32>
    %45 = arith.mulf %44, %41 : vector<8x7xf32>
    %46 = arith.addf %42, %45 : vector<8x7xf32>
    %cst_20 = arith.constant 0.000000e+00 : f32
    %47 = vector.broadcast %cst_20 : f32 to vector<8x7xf32>
    %48 = arith.subf %47, %46 : vector<8x7xf32>
    %cst_21 = arith.constant dense<0.000000e+00> : vector<8xf32>
    %49 = vector.multi_reduction <add>, %33, %cst_21 [1] : vector<8x7xf32> to vector<8xf32>
    %50 = vector.shape_cast %49 : vector<8xf32> to vector<8x1xf32>
    %51 = arith.mulf %48, %33 : vector<8x7xf32>
    %cst_22 = arith.constant dense<0.000000e+00> : vector<8xf32>
    %52 = vector.multi_reduction <add>, %51, %cst_22 [1] : vector<8x7xf32> to vector<8xf32>
    %53 = vector.shape_cast %52 : vector<8xf32> to vector<8x1xf32>
    %54 = arith.divf %53, %50 : vector<8x1xf32>
    %c0_23 = arith.constant 0 : index
    %c0_24 = arith.constant 0 : index
    %55 = vector.load %arg4[%c0_23, %c0_24] : memref<8x7xf32, #tpu.memory_space<vmem>>, vector<8x7xf32>
    tpu.vector_store %arg4[%c0_23, %c0_24], %9 {strides = array<i32>} : memref<8x7xf32, #tpu.memory_space<vmem>>, vector<8x7xf32>,
    %c0_25 = arith.constant 0 : index
    %c0_26 = arith.constant 0 : index
    %56 = vector.load %arg5[%c0_25, %c0_26] : memref<8x7xf32, #tpu.memory_space<vmem>>, vector<8x7xf32>
    tpu.vector_store %arg5[%c0_25, %c0_26], %17 {strides = array<i32>} : memref<8x7xf32, #tpu.memory_space<vmem>>, vector<8x7xf32>,
    %57 = tpu.iota {dimensions = array<i32: 1>} : vector<8x2xi32>
    %c0_i32 = arith.constant 0 : i32
    %58 = vector.broadcast %c0_i32 : i32 to vector<8x2xi32>
    %59 = arith.cmpi eq, %57, %58 : vector<8x2xi32>
    %60 = vector.shape_cast %54 : vector<8x1xf32> to vector<8x1xf32>
    %61 = vector.broadcast %60 : vector<8x1xf32> to vector<8x2xf32>
    %62 = vector.shape_cast %29 : vector<8x1xf32> to vector<8x1xf32>
    %63 = vector.broadcast %62 : vector<8x1xf32> to vector<8x2xf32>
    %64 = arith.select %59, %61, %63 : vector<8x2xi1>, vector<8x2xf32>
    %c0_27 = arith.constant 0 : index
    %c0_28 = arith.constant 0 : index
    %65 = vector.load %arg6[%c0_27, %c0_28] : memref<8x2xf32, #tpu.memory_space<vmem>>, vector<8x2xf32>
    tpu.vector_store %arg6[%c0_27, %c0_28], %64 {strides = array<i32>} : memref<8x2xf32, #tpu.memory_space<vmem>>, vector<8x2xf32>,
    return
  }
  func.func @transform_0(%arg0: i32) -> (i32, i32, i32) {
    %c0_i32 = arith.constant 0 : i32
    %c0_i32_0 = arith.constant 0 : i32
    %c0_i32_1 = arith.constant 0 : i32
    return %arg0, %c0_i32, %c0_i32_0 : i32, i32, i32
  }
  func.func @transform_1(%arg0: i32) -> (i32, i32, i32) {
    %c0_i32 = arith.constant 0 : i32
    %c0_i32_0 = arith.constant 0 : i32
    %c0_i32_1 = arith.constant 0 : i32
    return %arg0, %c0_i32, %c0_i32_0 : i32, i32, i32
  }
  func.func @transform_2(%arg0: i32) -> (i32, i32, i32) {
    %c0_i32 = arith.constant 0 : i32
    %c0_i32_0 = arith.constant 0 : i32
    %c0_i32_1 = arith.constant 0 : i32
    return %arg0, %c0_i32, %c0_i32_0 : i32, i32, i32
  }
  func.func @transform_3(%arg0: i32) -> (i32, i32) {
    %c0_i32 = arith.constant 0 : i32
    %c0_i32_0 = arith.constant 0 : i32
    return %arg0, %c0_i32 : i32, i32
  }
  func.func @transform_4(%arg0: i32) -> (i32, i32) {
    %c0_i32 = arith.constant 0 : i32
    %c0_i32_0 = arith.constant 0 : i32
    return %arg0, %c0_i32 : i32, i32
  }
  func.func @transform_5(%arg0: i32) -> (i32, i32) {
    %c0_i32 = arith.constant 0 : i32
    %c0_i32_0 = arith.constant 0 : i32
    return %arg0, %c0_i32 : i32, i32
  }
}

</mosaic_0001>

<bundles_post_ra>
// kernel: tpu_custom_call.1
= control target key start
LH: loop header
LB: loop body
LE: loop exit
PB: predicated region body
PF: predicated region fallthrough
CT: control target
= control target key end

     0   :  { %11 = vsyncpa [#allocation3], 0  ;;  %s1381_s0 = inlined_call_operand.hbm [shape: f32[8,8,16], index: 0, kind: input, shape index: {}]   ;;  %s1382_s1 = inlined_call_operand.hbm [shape: bf16[8,8,16], index: 1, kind: input, shape index: {}]   ;;  %s1383_s2 = inlined_call_operand.hbm [shape: bf16[8,8,16], index: 2, kind: input, shape index: {}]   ;;  %s1384_s3 = inlined_call_operand.hbm [shape: f32[8,7], index: 3, kind: output, shape index: {0}]   ;;  %s1385_s4 = inlined_call_operand.hbm [shape: f32[8,7], index: 4, kind: output, shape index: {1}]   ;;  %s1386_s5 = inlined_call_operand.vmem [shape: f32[8,2], index: 5, kind: output, shape index: {2}]  }
   0x1   :  { %12 = vsyncpa [#allocation6], 0 }
   0x2   :  { %13 = vsyncpa [#allocation4], 0 }
   0x3   :  { %14 = vsyncpa [#allocation10], 0  ;;  %s983_s18 = smov [#allocation5]   ;;  %s865_s22 = scalar_lea.hbm %s1382_s1, 512 }
   0x4   :  { %s32_s19 = sshll.u32 %s983_s18, 4  ;;  %p866_p0 = scmp.ne.s32.totalorder %s1382_s1, %s865_s22  ;;  %s33_s19 = int_to_ptr.vmem [resolvable:$true] %s32_s19 }
   0x5   :  { %p869_p1 = scmp.lt.u32.totalorder %s865_s22, %s1382_s1 }
   0x7   :  { %p871_p2 = pnand %p869_p1, %p866_p0 }
   0x9   :  { %874 = shalt.err (!%p871_p2)
}
   0xa   :  { %s875_s27 = scalar_lea.vmem %s33_s19, 512  ;;  %p880_p4 = scmp.lt.s32.totalorder %s33_s19, %s33_s19 }
   0xb   :  { %p876_p3 = scmp.ne.s32.totalorder %s33_s19, %s875_s27  ;;  %p881_p5 = scmp.lt.s32.totalorder %s875_s27, %s875_s27 }
   0xd   :  { %p882_p6 = por %p881_p5, %p880_p4 }
   0xf   :  { %p883_p7 = pnand %p882_p6, %p876_p3 }
  0x11   :  { %886 = shalt.err (!%p883_p7)
}
  0x12   :  { %s984_s28 = smov 64   ;;  %s985_s29 = smov 4  }
  0x13   :  { %38 = dma.hbm_to_vmem [thread:$0]  %s1382_s1, 512, %s33_s19, [#allocation6], %s984_s28, %s984_s28, %s985_s29  }
  0x14   :  { %s986_s7 = smov [#allocation2]   ;;  %s887_s11 = scalar_lea.hbm %s1381_s0, 1024 }
  0x15   :  { %s20_s8 = sshll.u32 %s986_s7, 4  ;;  %p888_p8 = scmp.ne.s32.totalorder %s1381_s0, %s887_s11  ;;  %s21_s8 = int_to_ptr.vmem [resolvable:$true] %s20_s8 }
  0x16   :  { %p891_p9 = scmp.lt.u32.totalorder %s887_s11, %s1381_s0 }
  0x18   :  { %p893_p10 = pnand %p891_p9, %p888_p8 }
  0x1a   :  { %896 = shalt.err (!%p893_p10)
}
  0x1b   :  { %s897_s16 = scalar_lea.vmem %s21_s8, 1024  ;;  %p902_p12 = scmp.lt.s32.totalorder %s21_s8, %s21_s8 }
  0x1c   :  { %p898_p11 = scmp.ne.s32.totalorder %s21_s8, %s897_s16  ;;  %p903_p13 = scmp.lt.s32.totalorder %s897_s16, %s897_s16 }
  0x1e   :  { %p904_p0 = por %p903_p13, %p902_p12 }
  0x20   :  { %p905_p1 = pnand %p904_p0, %p898_p11 }
  0x22   :  { %908 = shalt.err (!%p905_p1)
}
  0x23   :  { %s987_s1 = smov 128   ;;  %s988_s17 = smov 8  }
  0x24   :  { %26 = dma.hbm_to_vmem [thread:$0]  %s1381_s0, 1024, %s21_s8, [#allocation3], %s987_s1, %s987_s1, %s988_s17  }
  0x25   :  { %s989_s20 = smov [#allocation7]   ;;  %s909_s24 = scalar_lea.hbm %s1383_s2, 512 }
  0x26   :  { %s44_s21 = sshll.u32 %s989_s20, 4  ;;  %p910_p2 = scmp.ne.s32.totalorder %s1383_s2, %s909_s24  ;;  %s45_s21 = int_to_ptr.vmem [resolvable:$true] %s44_s21 }
  0x27   :  { %p913_p3 = scmp.lt.u32.totalorder %s909_s24, %s1383_s2 }
  0x29   :  { %p915_p4 = pnand %p913_p3, %p910_p2 }
  0x2b   :  { %918 = shalt.err (!%p915_p4)
}
  0x2c   :  { %s919_s6 = scalar_lea.vmem %s45_s21, 512  ;;  %p924_p6 = scmp.lt.s32.totalorder %s45_s21, %s45_s21 }
  0x2d   :  { %p920_p5 = scmp.ne.s32.totalorder %s45_s21, %s919_s6  ;;  %p925_p7 = scmp.lt.s32.totalorder %s919_s6, %s919_s6 }
  0x2f   :  { %p926_p8 = por %p925_p7, %p924_p6 }
  0x31   :  { %p927_p9 = pnand %p926_p8, %p920_p5 }
  0x33   :  { %930 = shalt.err (!%p927_p9)
}
  0x34   :  { %50 = dma.hbm_to_vmem [thread:$0]  %s1383_s2, 512, %s45_s21, [#allocation6], %s984_s28, %s984_s28, %s985_s29  }
  0x35   :  { %975 = dma.done.wait [#allocation3], 1024  }
  0x36   :  { %976 = vsyncadd [#allocation3], 4294966272 }
  0x37   :  { %977 = dma.done.wait [#allocation6], 1024  }
  0x38   :  { %978 = vsyncadd [#allocation6], 4294966272  ;;  %v1066_v0 = vld [vmem:[#allocation5] sm:$0xff]   ;;  %v1072_v4 = vld [vmem:[#allocation5 + $0x8] sm:$0xff]   ;;  %vm140_vm0 = vcmask 129024   ;;  %vm310_vm1 = vcmask 1041409  }
  0x39   :  { %v1068_v1 = vld [vmem:[#allocation7] sm:$0xff]   ;;  %v782_v2 = vunpack.c.l.bf16 %v1066_v0  ;;  %v1074_v5 = vld [vmem:[#allocation7 + $0x8] sm:$0xff]   ;;  %v783_v6 = vunpack.c.h.bf16 %v1066_v0  ;;  %v786_v8 = vunpack.c.l.bf16 %v1072_v4  ;;  %v787_v10 = vunpack.c.h.bf16 %v1072_v4  ;;  %v1090_v15 = vld [vmem:[#allocation5 + $0x10] sm:$0xff]   ;;  %s992_s2 = smov [#allocation8]   ;;  %s993_s29 = smov [#allocation9]  }
  0x3a   :  { %v798_v3 = vunpack.c.l.bf16 %v1068_v1  ;;  %v799_v7 = vunpack.c.h.bf16 %v1068_v1  ;;  %v802_v9 = vunpack.c.l.bf16 %v1074_v5  ;;  %v803_v11 = vunpack.c.h.bf16 %v1074_v5  ;;  %v60_v12 = vld [vmem:[#allocation2] sm:$0xff]  ;;  %v1092_v16 = vld [vmem:[#allocation7 + $0x10] sm:$0xff]   ;;  %v61_v18 = vld [vmem:[#allocation2 + $0x8] sm:$0xff]  ;;  %s751_s28 = sshll.u32 %s992_s2, 4  ;;  %s761_s8 = sshll.u32 %s993_s29, 4  ;;  %s752_s28 = int_to_ptr.vmem [resolvable:$true] %s751_s28  ;;  %s762_s8 = int_to_ptr.vmem [resolvable:$true] %s761_s8 }
  0x3b   :  { %v790_v20 = vunpack.c.l.bf16 %v1090_v15  ;;  %v806_v21 = vunpack.c.l.bf16 %v1092_v16  ;;  %v1104_v22 = vld [vmem:[#allocation5 + $0x18] sm:$0xff]   ;;  %v62_v25 = vld [vmem:[#allocation2 + $0x10] sm:$0xff]  ;;  %v791_v28 = vunpack.c.h.bf16 %v1090_v15  ;;  %v807_v29 = vunpack.c.h.bf16 %v1092_v16  ;;  %v64_v40 = vld [vmem:[#allocation2 + $0x20] sm:$0xff]  ;;  %s931_s9 = scalar_lea.vmem %s752_s28, 128  ;;  %p936_p11 = scmp.lt.s32.totalorder %s752_s28, %s752_s28 }
  0x3c   :  { %v100_v13 = vadd.f32 %v798_v3, %v782_v2  ;;  %v101_v14 = vadd.f32 %v799_v7, %v783_v6  ;;  %v102_v17 = vadd.f32 %v802_v9, %v786_v8  ;;  %v103_v19 = vadd.f32 %v803_v11, %v787_v10  ;;  %v1106_v23 = vld [vmem:[#allocation7 + $0x18] sm:$0xff]   ;;  %v65_v44 = vld [vmem:[#allocation2 + $0x28] sm:$0xff]  ;;  %v66_v54 = vld [vmem:[#allocation2 + $0x30] sm:$0xff]  ;;  %p932_p10 = scmp.ne.s32.totalorder %s752_s28, %s931_s9  ;;  %p937_p12 = scmp.lt.s32.totalorder %s931_s9, %s931_s9 }
  0x3d   :  { %v63_v27 = vld [vmem:[#allocation2 + $0x18] sm:$0xff]  ;;  %v104_v32 = vadd.f32 %v806_v21, %v790_v20  ;;  %v794_v33 = vunpack.c.l.bf16 %v1104_v22  ;;  %v105_v36 = vadd.f32 %v807_v29, %v791_v28  ;;  %v810_v37 = vunpack.c.l.bf16 %v1106_v23 }
  0x3e   :  { %v116_v24 = vrot.slane %v100_v13, 1  ;;  %v117_v26 = vrot.slane %v101_v14, 1  ;;  %v118_v30 = vrot.slane %v102_v17, 1  ;;  %v119_v31 = vrot.slane %v103_v19, 1  ;;  %v67_v56 = vld [vmem:[#allocation2 + $0x38] sm:$0xff]  ;;  %p938_p13 = por %p937_p12, %p936_p11 }
  0x3f   :  { %v120_v41 = vrot.slane %v104_v32, 1  ;;  %v795_v42 = vunpack.c.h.bf16 %v1104_v22  ;;  %v121_v45 = vrot.slane %v105_v36, 1  ;;  %v106_v46 = vadd.f32 %v810_v37, %v794_v33 }
  0x40   :  { %v132_v34 = vmul.f32 %v116_v24, %v60_v12  ;;  %v133_v35 = vmul.f32 %v117_v26, %v61_v18  ;;  %v134_v38 = vmul.f32 %v118_v30, %v62_v25  ;;  %v135_v39 = vmul.f32 %v119_v31, %v63_v27  ;;  %p939_p0 = pnand %p938_p13, %p932_p10 }
  0x41   :  { %v811_v48 = vunpack.c.h.bf16 %v1106_v23  ;;  %v136_v50 = vmul.f32 %v120_v41, %v64_v40  ;;  %v122_v51 = vrot.slane %v106_v46, 1  ;;  %v137_v53 = vmul.f32 %v121_v45, %v65_v44 }
  0x42   :  { %v141_v43 = vsel %vm140_vm0, %v132_v34, 0.0  ;;  %v147_v47 = vsel %vm140_vm0, %v134_v38, 0.0  ;;  %v144_v49 = vsel %vm140_vm0, %v133_v35, 0.0  ;;  %v150_v52 = vsel %vm140_vm0, %v135_v39, 0.0 }
  0x43   :  { %142 = vadd.xlane.f32.xlu0 %v141_v43  ;;  %148 = vadd.xlane.f32.xlu1 %v147_v47  ;;  %v107_v55 = vadd.f32 %v811_v48, %v795_v42  ;;  %v153_v58 = vsel %vm140_vm0, %v136_v50, 0.0  ;;  %v138_v59 = vmul.f32 %v122_v51, %v66_v54  ;;  %v156_v60 = vsel %vm140_vm0, %v137_v53, 0.0 }
  0x44   :  { %v222_v12 = vlaneseq  ;;  %v990_v17 = vmov 0   ;;  %v165_v18 = vsub.f32 %v782_v2, %v798_v3  ;;  %vm312_vm2 = vcmask 1042434  }
  0x45   :  { %v123_v57 = vrot.slane %v107_v55, 1  ;;  %v159_v62 = vsel %vm140_vm0, %v138_v59, 0.0  ;;  %830 = vset.pattern.permute.xlu0 %v990_v17  ;;  %829 = vset.pattern.permute.xlu1 %v990_v17  ;;  %vm314_vm5 = vcmask 1043459   ;;  %vm316_vm6 = vcmask 1044484  }
  0x46   :  { %v1138_v13 = vand.u32 127, %v222_v12  ;;  %v1149_v24 = vshrl.u32 %v222_v12, 7  ;;  %vm318_vm10 = vcmask 1045509   ;;  %vm320_vm11 = vcmask 1046534  }
  0x47   :  { %145 = vadd.xlane.f32.xlu0 %v144_v49  ;;  %151 = vadd.xlane.f32.xlu1 %v150_v52  ;;  %v139_v61 = vmul.f32 %v123_v57, %v67_v56  ;;  %vm322_vm12 = vcmask 1047559   ;;  %vm325_vm13 = vcmask 56320   ;;  %v171_v12 = vsub.f32 %v794_v33, %v810_v37 }
  0x48   :  { %v224_v14 = vcvt.s32.f32 %v1138_v13  ;;  %v1157_v27 = vsub.s32 %v1138_v13, %v1149_v24  ;;  %v168_v0 = vsub.f32 %v787_v10, %v803_v11 }
  0x49   :  { %v162_v63 = vsel %vm140_vm0, %v139_v61, 0.0 }
  0x4b   :  { %154 = vadd.xlane.f32.xlu0 %v153_v58  ;;  %157 = vadd.xlane.f32.xlu1 %v156_v60 }
  0x4f   :  { %160 = vadd.xlane.f32.xlu0 %v159_v62  ;;  %163 = vadd.xlane.f32.xlu1 %v162_v63  ;;  %v169_v62 = vsub.f32 %v790_v20, %v806_v21 }
  0x65   :  { %235 = vbcast.lane.b32.xlu0 %v224_v14, 256 }
  0xd0   :  { %v1147_v19 = vpop.xlane.xlu0 %142  ;;  %v1151_v25 = vpop.xlane.xlu1 %148 }
  0xd1   :  { %v651_v2 = vrot.slane %v1147_v19, %v1157_v27  ;;  %v659_v3 = vrot.slane %v1151_v25, %v1157_v27  ;;  %vm225_vm4 = vcmp.gt.f32.partialorder %v1147_v19, 0.0  ;;  %vm227_vm9 = vcmp.gt.f32.partialorder %v1151_v25, 0.0 }
  0xd2   :  { %v358_v5 = vsub.f32 1.0, %v1147_v19  ;;  %831 = vlog2.f32 %v1147_v19 }
  0xd4   :  { %v1153_v26 = vpop.xlane.xlu0 %145  ;;  %v1163_v32 = vpop.xlane.xlu1 %151  ;;  %833 = vlog2.f32 %v358_v5 }
  0xd5   :  { %v655_v31 = vrot.slane %v1153_v26, %v1157_v27  ;;  %vm228_vm3 = vcmp.gt.f32.partialorder %v1163_v32, 0.0  ;;  %v663_v36 = vrot.slane %v1163_v32, %v1157_v27  ;;  %vm226_vm8 = vcmp.gt.f32.partialorder %v1153_v26, 0.0 }
  0xd7   :  { %v680_v35 = vsel %vm310_vm1, %v655_v31, %v651_v2 }
  0xd8   :  { %v1159_v30 = vpop.xlane.xlu0 %154  ;;  %v1175_v38 = vpop.xlane.xlu1 %157  ;;  %v681_v40 = vsel %vm312_vm2, %v659_v3, %v680_v35 }
  0xd9   :  { %v667_v44 = vrot.slane %v1159_v30, %v1157_v27  ;;  %v682_v45 = vsel %vm314_vm5, %v663_v36, %v681_v40  ;;  %v671_v46 = vrot.slane %v1175_v38, %v1157_v27  ;;  %vm229_vm14 = vcmp.gt.f32.partialorder %v1159_v30, 0.0 }
  0xda   :  { %vm230_vm15 = vcmp.gt.f32.partialorder %v1175_v38, 0.0  ;;  %835 = vlog2.f32 %v1159_v30 }
  0xdb   :  { %v683_v52 = vsel %vm316_vm6, %v667_v44, %v682_v45 }
  0xdc   :  { %v1169_v34 = vpop.xlane.xlu0 %160  ;;  %v1186_v47 = vpop.xlane.xlu1 %163  ;;  %v684_v55 = vsel %vm318_vm10, %v671_v46, %v683_v52 }
  0xdd   :  { %vm231_vm7 = vcmp.gt.f32.partialorder %v1169_v34, 0.0  ;;  %v675_v51 = vrot.slane %v1169_v34, %v1157_v27  ;;  %v679_v53 = vrot.slane %v1186_v47, %v1157_v27  ;;  %vm232_vm0 = vcmp.gt.f32.partialorder %v1186_v47, 0.0  ;;  %v832_v11 = vpop.eup %831 }
  0xde   :  { %v364_v10 = vsub.f32 1.0, %v1169_v34  ;;  %v834_v15 = vpop.eup %833  ;;  %v335_v16 = vmul.f32 0.6931472, %v832_v11  ;;  %v492_v11 = vsub.s32 1, %v1149_v24 }
  0xdf   :  { %v685_v56 = vsel %vm320_vm11, %v675_v51, %v684_v55  ;;  %v367_v23 = vmul.f32 0.6931472, %v834_v15  ;;  %v594_v15 = vadd.s32 1, %v1138_v13 }
  0xe0   :  { %v236_v39 = vpop.permute.xlu0 %235  ;;  %v686_v57 = vsel %vm322_vm12, %v679_v53, %v685_v56 }
  0xe1   :  { %v241_v41 = vsel %vm228_vm3, %v236_v39, 7.0  ;;  %v238_v43 = vsel %vm225_vm4, %v236_v39, 7.0  ;;  %v244_v49 = vsel %vm231_vm7, %v236_v39, 7.0  ;;  %v239_v50 = vsel %vm226_vm8, %v236_v39, 7.0  ;;  %688 = vst.msk [vmem:[#allocation8] sm:$0xff] %vm325_vm13, %v686_v57 }
  0xe2   :  { %264 = vperm.xlu0 %830, %v241_v41   ;;  %255 = vperm.xlu1 %829, %v238_v43   ;;  %v240_v54 = vsel %vm227_vm9, %v236_v39, 7.0  ;;  %v242_v58 = vsel %vm229_vm14, %v236_v39, 7.0  ;;  %v243_v59 = vsel %vm230_vm15, %v236_v39, 7.0  ;;  %v245_v60 = vsel %vm232_vm0, %v236_v39, 7.0 }
  0xe3   :  { %vm173_vm3 = vcmask 130048   ;;  %vm737_vm8 = vcmask 56321   ;;  %vm739_vm9 = vcmask 49152  }
  0xe4   :  { %v174_v61 = vsel %vm173_vm3, %v165_v18, 0.0  ;;  %v186_v63 = vsel %vm173_vm3, %v169_v62, 0.0  ;;  %v192_v17 = vsel %vm173_vm3, %v171_v12, 0.0  ;;  %v183_v1 = vsel %vm173_vm3, %v168_v0, 0.0  ;;  %v836_v22 = vpop.eup %835 }
  0xe6   :  { %273 = vperm.xlu0 %830, %v244_v49   ;;  %258 = vperm.xlu1 %829, %v239_v50  }
  0xea   :  { %261 = vperm.xlu1 %829, %v240_v54   ;;  %v166_v54 = vsub.f32 %v783_v6, %v799_v7  ;;  %v170_v6 = vsub.f32 %v791_v28, %v807_v29 }
  0xec   :  { %v177_v57 = vsel %vm173_vm3, %v166_v54, 0.0  ;;  %v189_v7 = vsel %vm173_vm3, %v170_v6, 0.0  ;;  %v360_v6 = vsub.f32 1.0, %v1151_v25 }
  0xee   :  { %267 = vperm.xlu1 %829, %v242_v58   ;;  %v167_v58 = vsub.f32 %v786_v8, %v802_v9  ;;  %v172_v8 = vsub.f32 %v795_v42, %v811_v48  ;;  %v362_v9 = vsub.f32 1.0, %v1159_v30  ;;  %v350_v48 = vmax.f32 %v335_v16, -100.0 }
  0xf0   :  { %v195_v4 = vsel %vm173_vm3, %v172_v8, 0.0  ;;  %837 = vlog2.f32 %v362_v9  ;;  %v363_v8 = vsub.f32 1.0, %v1175_v38 }
  0xf1   :  { %839 = vlog2.f32 %v1169_v34 }
  0xf2   :  { %270 = vperm.xlu1 %829, %v243_v59   ;;  %841 = vlog2.f32 %v364_v10  ;;  %v382_v59 = vmax.f32 %v367_v23, -100.0 }
  0xf3   :  { %843 = vlog2.f32 %v1153_v26 }
  0xf6   :  { %276 = vperm.xlu1 %829, %v245_v60   ;;  %v343_v60 = vmul.f32 0.6931472, %v836_v22 }
  0xfa   :  { %v838_v28 = vpop.eup %837 }
  0xfb   :  { %v840_v19 = vpop.eup %839 }
  0xfc   :  { %v842_v62 = vpop.eup %841 }
 0x11a   :  { %175 = vadd.xlane.f32.xlu1 %v174_v61  ;;  %v375_v61 = vmul.f32 0.6931472, %v838_v28  ;;  %v991_v28 = vmov 0.0  }
 0x11e   :  { %187 = vadd.xlane.f32.xlu1 %v186_v63 }
 0x122   :  { %193 = vadd.xlane.f32.xlu1 %v192_v17  ;;  %v398_v17 = vrot.slane %v350_v48, 7  ;;  %v524_v48 = vsub.s32 5, %v1149_v24 }
 0x161   :  { %v256_v31 = vpop.permute.xlu1 %255  ;;  %v265_v20 = vpop.permute.xlu0 %264 }
 0x162   :  { %v281_v21 = vrot.slane %v256_v31, %v1157_v27  ;;  %v293_v37 = vrot.slane %v265_v20, %v1157_v27  ;;  %v347_v31 = vmul.f32 0.6931472, %v840_v19 }
 0x165   :  { %v259_v2 = vpop.permute.xlu1 %258  ;;  %v274_v43 = vpop.permute.xlu0 %273 }
 0x166   :  { %v285_v3 = vrot.slane %v259_v2, %v1157_v27  ;;  %v305_v50 = vrot.slane %v274_v43, %v1157_v27  ;;  %v438_v2 = vrot.slane %v382_v59, 7 }
 0x168   :  { %v311_v39 = vsel %vm310_vm1, %v285_v3, %v281_v21  ;;  %v386_v3 = vmax.f32 %v375_v61, -100.0 }
 0x169   :  { %v262_v18 = vpop.permute.xlu1 %261 }
 0x16a   :  { %v289_v35 = vrot.slane %v262_v18, %v1157_v27  ;;  %v354_v18 = vmax.f32 %v343_v60, -100.0 }
 0x16c   :  { %v313_v40 = vsel %vm312_vm2, %v289_v35, %v311_v39  ;;  %v402_v43 = vrot.slane %v354_v18, 7 }
 0x16d   :  { %v268_v36 = vpop.permute.xlu1 %267  ;;  %v315_v44 = vsel %vm314_vm5, %v293_v37, %v313_v40 }
 0x16e   :  { %v297_v33 = vrot.slane %v268_v36, %v1157_v27  ;;  %v379_v36 = vmul.f32 0.6931472, %v842_v62  ;;  %v500_v62 = vsub.s32 2, %v1149_v24 }
 0x170   :  { %v317_v46 = vsel %vm316_vm6, %v297_v33, %v315_v44  ;;  %v442_v44 = vrot.slane %v386_v3, 7 }
 0x171   :  { %v271_v41 = vpop.permute.xlu1 %270 }
 0x172   :  { %v301_v45 = vrot.slane %v271_v41, %v1157_v27  ;;  %v356_v41 = vmax.f32 %v347_v31, -100.0 }
 0x174   :  { %v319_v49 = vsel %vm318_vm10, %v301_v45, %v317_v46  ;;  %v404_v54 = vrot.slane %v356_v41, 7 }
 0x175   :  { %v277_v51 = vpop.permute.xlu1 %276  ;;  %v321_v53 = vsel %vm320_vm11, %v305_v50, %v319_v49  ;;  %v388_v50 = vmax.f32 %v379_v36, -100.0 }
 0x176   :  { %v309_v52 = vrot.slane %v277_v51, %v1157_v27  ;;  %v180_v27 = vsel %vm173_vm3, %v167_v58, 0.0 }
 0x177   :  { %v444_v58 = vrot.slane %v388_v50, 7 }
 0x178   :  { %v323_v55 = vsel %vm322_vm12, %v309_v52, %v321_v53 }
 0x179   :  { %v326_v56 = vsel %vm325_vm13, %v323_v55, inf }
 0x17a   :  { %327 = vmin.xlane.f32.xlu0 %v326_v56 }
 0x17e   :  { %178 = vadd.xlane.f32.xlu0 %v177_v57 }
 0x182   :  { %181 = vadd.xlane.f32.xlu0 %v180_v27 }
 0x186   :  { %184 = vadd.xlane.f32.xlu0 %v183_v1  ;;  %v359_v1 = vsub.f32 1.0, %v1153_v26 }
 0x188   :  { %845 = vlog2.f32 %v359_v1 }
 0x189   :  { %847 = vlog2.f32 %v1151_v25  ;;  %v484_v25 = vsub.s32 0, %v1149_v24 }
 0x18a   :  { %190 = vadd.xlane.f32.xlu0 %v189_v7  ;;  %v361_v7 = vsub.f32 1.0, %v1163_v32  ;;  %849 = vlog2.f32 %v360_v6 }
 0x18b   :  { %851 = vlog2.f32 %v1163_v32 }
 0x18c   :  { %853 = vlog2.f32 %v361_v7 }
 0x18d   :  { %855 = vlog2.f32 %v1175_v38 }
 0x18e   :  { %196 = vadd.xlane.f32.xlu0 %v195_v4  ;;  %v844_v4 = vpop.eup %843  ;;  %857 = vlog2.f32 %v363_v8 }
 0x18f   :  { %v337_v10 = vmul.f32 0.6931472, %v844_v4 }
 0x191   :  { %v351_v19 = vmax.f32 %v337_v10, -100.0 }
 0x192   :  { %v846_v5 = vpop.eup %845 }
 0x193   :  { %v848_v9 = vpop.eup %847  ;;  %v369_v32 = vmul.f32 0.6931472, %v846_v5 }
 0x194   :  { %v850_v22 = vpop.eup %849  ;;  %v339_v38 = vmul.f32 0.6931472, %v848_v9 }
 0x195   :  { %v852_v23 = vpop.eup %851 }
 0x196   :  { %v854_v59 = vpop.eup %853  ;;  %v341_v18 = vmul.f32 0.6931472, %v852_v23 }
 0x197   :  { %v373_v36 = vmul.f32 0.6931472, %v854_v59 }
 0x198   :  { %v353_v1 = vmax.f32 %v341_v18, -100.0 }
 0x199   :  { %v385_v6 = vmax.f32 %v373_v36, -100.0 }
 0x1a7   :  { %v176_v29 = vpop.xlane.xlu1 %175 }
 0x1a8   :  { %v198_v42 = vadd.f32 1.0, %v176_v29 }
 0x1aa   :  { %v206_v30 = vmul.f32 0.5, %v198_v42 }
 0x1ab   :  { %v188_v63 = vpop.xlane.xlu1 %187 }
 0x1ac   :  { %v1259_v12 = vfloor.f32 %v206_v30  ;;  %v202_v34 = vadd.f32 1.0, %v188_v63  ;;  %v1300_v63 = vsub.s32 %v594_v15, %v1149_v24 }
 0x1ae   :  { %v422_v35 = vsub.f32 1.0, %v1259_v12  ;;  %v210_v20 = vmul.f32 0.5, %v202_v34  ;;  %v414_v21 = vmul.f32 %v398_v17, %v1259_v12  ;;  %v371_v34 = vmul.f32 0.6931472, %v850_v22  ;;  %v856_v17 = vpop.eup %855 }
 0x1af   :  { %v194_v39 = vpop.xlane.xlu1 %193 }
 0x1b0   :  { %v1263_v40 = vfloor.f32 %v210_v20  ;;  %v204_v33 = vadd.f32 1.0, %v194_v39  ;;  %v454_v37 = vmul.f32 %v438_v2, %v422_v35  ;;  %v352_v2 = vmax.f32 %v339_v38, -100.0 }
 0x1b1   :  { %v540_v35 = vsub.s32 7, %v1149_v24  ;;  %v508_v20 = vsub.s32 3, %v1149_v24  ;;  %v384_v50 = vmax.f32 %v371_v34, -100.0  ;;  %v532_v38 = vsub.s32 6, %v1149_v24 }
 0x1b2   :  { %v426_v45 = vsub.f32 1.0, %v1263_v40  ;;  %v212_v46 = vmul.f32 0.5, %v204_v33  ;;  %v1266_v49 = vadd.f32 %v454_v37, %v414_v21  ;;  %v418_v51 = vmul.f32 %v402_v43, %v1263_v40  ;;  %v858_v43 = vpop.eup %857 }
 0x1b3   :  { %v399_v21 = vrot.slane %v351_v19, 7  ;;  %v377_v9 = vmul.f32 0.6931472, %v858_v43  ;;  %v440_v10 = vrot.slane %v384_v50, 7 }
 0x1b4   :  { %v1269_v52 = vfloor.f32 %v212_v46  ;;  %v458_v53 = vmul.f32 %v442_v44, %v426_v45  ;;  %v700_v44 = vrot.slane %v1259_v12, %v1300_v63  ;;  %v345_v46 = vmul.f32 0.6931472, %v856_v17 }
 0x1b6   :  { %v428_v55 = vsub.f32 1.0, %v1269_v52  ;;  %v1272_v56 = vadd.f32 %v458_v53, %v418_v51  ;;  %v420_v57 = vmul.f32 %v404_v54, %v1269_v52  ;;  %v355_v23 = vmax.f32 %v345_v46, -100.0 }
 0x1b8   :  { %v460_v27 = vmul.f32 %v444_v58, %v428_v55 }
 0x1ba   :  { %v1275_v0 = vadd.f32 %v460_v27, %v420_v57  ;;  %v516_v27 = vsub.s32 4, %v1149_v24 }
 0x207   :  { %v328_v26 = vpop.xlane.xlu0 %327 }
 0x208   :  { %vm329_vm4 = vcmp.lt.f32.partialorder %v328_v26, 7.0 }
 0x209   :  { %v1288_v16 = vsel %vm329_vm4, %v328_v26, 0.0  ;;  %v400_v26 = vrot.slane %v352_v2, 7 }
 0x20a   :  { %vm331_vm7 = vcmp.ge.f32.partialorder %v224_v14, %v1288_v16  ;;  %v383_v14 = vmax.f32 %v369_v32, -100.0 }
 0x20b   :  { %v1293_v29 = vsel %vm331_vm7, 1.0, %v991_v28  ;;  %v179_v42 = vpop.xlane.xlu0 %178 }
 0x20c   :  { %v199_v60 = vadd.f32 1.0, %v179_v42  ;;  %v493_v61 = vrot.slane %v1293_v29, %v492_v11  ;;  %v485_v30 = vrot.slane %v1293_v29, %v484_v25  ;;  %v525_v37 = vrot.slane %v1293_v29, %v524_v48 }
 0x20d   :  { %v501_v41 = vrot.slane %v1293_v29, %v500_v62  ;;  %v439_v45 = vrot.slane %v383_v14, 7  ;;  %v541_v58 = vrot.slane %v1293_v29, %v540_v35  ;;  %v509_v12 = vrot.slane %v1293_v29, %v508_v20 }
 0x20e   :  { %v207_v31 = vmul.f32 0.5, %v199_v60  ;;  %496 = vbcast.lane.b32.xlu0 %v493_v61, 511  ;;  %488 = vbcast.lane.b32.xlu1 %v485_v30, 511  ;;  %v401_v42 = vrot.slane %v353_v1, 7  ;;  %v517_v59 = vrot.slane %v1293_v29, %v516_v27  ;;  %v441_v60 = vrot.slane %v385_v6, 7 }
 0x20f   :  { %v182_v3 = vpop.xlane.xlu0 %181  ;;  %v716_v61 = vrot.slane %v1263_v40, %v1300_v63  ;;  %v387_v62 = vmax.f32 %v377_v9, -100.0  ;;  %v533_v18 = vrot.slane %v1293_v29, %v532_v38 }
 0x210   :  { %v215_v39 = vfloor.f32 %v207_v31  ;;  %v200_v33 = vadd.f32 1.0, %v182_v3  ;;  %v403_v3 = vrot.slane %v355_v23, 7 }
 0x212   :  { %v423_v51 = vsub.f32 1.0, %v215_v39  ;;  %v704_v53 = vrot.slane %v215_v39, %v1300_v63  ;;  %v208_v54 = vmul.f32 0.5, %v200_v33  ;;  %528 = vbcast.lane.b32.xlu0 %v525_v37, 511  ;;  %504 = vbcast.lane.b32.xlu1 %v501_v41, 511  ;;  %v415_v55 = vmul.f32 %v399_v21, %v215_v39 }
 0x213   :  { %v185_v57 = vpop.xlane.xlu0 %184  ;;  %v724_v39 = vrot.slane %v1269_v52, %v1300_v63  ;;  %v443_v33 = vrot.slane %v387_v62, 7 }
 0x214   :  { %v216_v7 = vfloor.f32 %v208_v54  ;;  %v201_v8 = vadd.f32 1.0, %v185_v57  ;;  %v455_v4 = vmul.f32 %v439_v45, %v423_v51  ;;  %v729_v5 = vsel %vm312_vm2, %v704_v53, %v700_v44 }
 0x215   :  { %v365_v57 = vsub.f32 1.0, %v1186_v47 }
 0x216   :  { %v424_v11 = vsub.f32 1.0, %v216_v7  ;;  %v708_v25 = vrot.slane %v216_v7, %v1300_v63  ;;  %v209_v15 = vmul.f32 0.5, %v201_v8  ;;  %544 = vbcast.lane.b32.xlu0 %v541_v58, 511  ;;  %512 = vbcast.lane.b32.xlu1 %v509_v12, 511  ;;  %v463_v32 = vadd.f32 %v455_v4, %v415_v55 }
 0x217   :  { %v191_v22 = vpop.xlane.xlu0 %190  ;;  %v416_v28 = vmul.f32 %v400_v26, %v216_v7  ;;  %859 = vlog2.f32 %v365_v57  ;;  %v470_v7 = vsub.f32 0.0, %v1266_v49 }
 0x218   :  { %v217_v48 = vfloor.f32 %v209_v15  ;;  %v203_v19 = vadd.f32 1.0, %v191_v22  ;;  %v730_v30 = vsel %vm314_vm5, %v708_v25, %v729_v5  ;;  %v456_v14 = vmul.f32 %v440_v10, %v424_v11 }
 0x219   :  { %861 = vlog2.f32 %v1186_v47  ;;  %v471_v6 = vsub.f32 0.0, %v463_v32 }
 0x21a   :  { %v425_v34 = vsub.f32 1.0, %v217_v48  ;;  %v712_v17 = vrot.slane %v217_v48, %v1300_v63  ;;  %v211_v31 = vmul.f32 0.5, %v203_v19  ;;  %520 = vbcast.lane.b32.xlu1 %v517_v59, 511  ;;  %v417_v24 = vmul.f32 %v401_v42, %v217_v48 }
 0x21b   :  { %v197_v2 = vpop.xlane.xlu0 %196  ;;  %v464_v35 = vadd.f32 %v456_v14, %v416_v28 }
 0x21c   :  { %v731_v20 = vsel %vm316_vm6, %v712_v17, %v730_v30  ;;  %v219_v21 = vfloor.f32 %v211_v31  ;;  %v205_v36 = vadd.f32 1.0, %v197_v2  ;;  %v457_v40 = vmul.f32 %v441_v60, %v425_v34 }
 0x21d   :  { %v732_v37 = vsel %vm318_vm10, %v716_v61, %v731_v20  ;;  %v472_v11 = vsub.f32 0.0, %v464_v35  ;;  %v474_v60 = vsub.f32 0.0, %v1272_v56  ;;  %v476_v17 = vsub.f32 0.0, %v1275_v0 }
 0x21e   :  { %v427_v41 = vsub.f32 1.0, %v219_v21  ;;  %v720_v43 = vrot.slane %v219_v21, %v1300_v63  ;;  %v213_v44 = vmul.f32 0.5, %v205_v36  ;;  %536 = vbcast.lane.b32.xlu1 %v533_v18, 511  ;;  %v419_v45 = vmul.f32 %v403_v3, %v219_v21 }
 0x21f   :  { %v465_v46 = vadd.f32 %v457_v40, %v417_v24  ;;  %v478_v18 = vsel %vm325_vm13, %v1293_v29, 0.0 }
 0x220   :  { %v221_v50 = vfloor.f32 %v213_v44  ;;  %v459_v51 = vmul.f32 %v443_v33, %v427_v41  ;;  %v733_v53 = vsel %vm320_vm11, %v720_v43, %v732_v37 }
 0x221   :  { %v734_v54 = vsel %vm322_vm12, %v724_v39, %v733_v53  ;;  %v860_v58 = vpop.eup %859  ;;  %v473_v32 = vsub.f32 0.0, %v465_v46 }
 0x222   :  { %v728_v52 = vrot.slane %v221_v50, %v1300_v63  ;;  %v467_v55 = vadd.f32 %v459_v51, %v419_v45  ;;  %738 = vst.msk [vmem:[#allocation9 - $0x1] sm:$0xfe] %vm737_vm8, %v734_v54  ;;  %v381_v1 = vmul.f32 0.6931472, %v860_v58  ;;  %v429_v10 = vsub.f32 1.0, %v221_v50 }
 0x223   :  { %v862_v27 = vpop.eup %861 }
 0x224   :  { %740 = vst.msk [vmem:[#allocation9 + $0x7] sm:$0x1] %vm739_vm9, %v728_v52  ;;  %v349_v8 = vmul.f32 0.6931472, %v862_v27  ;;  %v389_v26 = vmax.f32 %v381_v1, -100.0  ;;  %v475_v19 = vsub.f32 0.0, %v467_v55 }
 0x226   :  { %v357_v25 = vmax.f32 %v349_v8, -100.0  ;;  %v445_v47 = vrot.slane %v389_v26, 7 }
 0x228   :  { %v405_v38 = vrot.slane %v357_v25, 7  ;;  %v461_v23 = vmul.f32 %v445_v47, %v429_v10 }
 0x22a   :  { %v421_v42 = vmul.f32 %v405_v38, %v221_v50 }
 0x22c   :  { %v469_v59 = vadd.f32 %v461_v23, %v421_v42 }
 0x22e   :  { %v477_v34 = vsub.f32 0.0, %v469_v59 }
 0x280   :  { %v497_v12 = vpop.permute.xlu0 %496  ;;  %v489_v4 = vpop.permute.xlu1 %488 }
 0x281   :  { %v555_v5 = vmul.f32 %v497_v12, %v471_v6  ;;  %v554_v9 = vmul.f32 %v489_v4, %v470_v7 }
 0x283   :  { %574 = vperm.xlu0 %830, %v555_v5   ;;  %571 = vperm.xlu1 %829, %v554_v9  }
 0x284   :  { %v505_v15 = vpop.permute.xlu1 %504  ;;  %v529_v28 = vpop.permute.xlu0 %528 }
 0x285   :  { %v556_v22 = vmul.f32 %v505_v15, %v472_v11  ;;  %v559_v30 = vmul.f32 %v529_v28, %v475_v19 }
 0x287   :  { %577 = vperm.xlu1 %829, %v556_v22  }
 0x288   :  { %v513_v49 = vpop.permute.xlu1 %512  ;;  %v545_v14 = vpop.permute.xlu0 %544 }
 0x289   :  { %v557_v48 = vmul.f32 %v513_v49, %v473_v32  ;;  %v561_v24 = vmul.f32 %v545_v14, %v477_v34 }
 0x28b   :  { %580 = vperm.xlu0 %830, %v557_v48  }
 0x28c   :  { %v521_v61 = vpop.permute.xlu1 %520 }
 0x28d   :  { %v558_v62 = vmul.f32 %v521_v61, %v474_v60 }
 0x28f   :  { %586 = vperm.xlu0 %830, %v559_v30   ;;  %583 = vperm.xlu1 %829, %v558_v62  }
 0x290   :  { %v537_v31 = vpop.permute.xlu1 %536 }
 0x291   :  { %v560_v2 = vmul.f32 %v537_v31, %v476_v17 }
 0x293   :  { %592 = vperm.xlu0 %830, %v561_v24   ;;  %589 = vperm.xlu1 %829, %v560_v2  }
 0x2b7   :  { %479 = vadd.xlane.f32.xlu1 %v478_v18 }
 0x302   :  { %v572_v3 = vpop.permute.xlu1 %571  ;;  %v575_v56 = vpop.permute.xlu0 %574 }
 0x303   :  { %v602_v20 = vrot.slane %v575_v56, %v1300_v63  ;;  %v598_v21 = vrot.slane %v572_v3, %v1300_v63 }
 0x305   :  { %v627_v39 = vsel %vm310_vm1, %v602_v20, %v598_v21 }
 0x306   :  { %v578_v35 = vpop.permute.xlu1 %577 }
 0x307   :  { %v606_v40 = vrot.slane %v578_v35, %v1300_v63 }
 0x309   :  { %v628_v41 = vsel %vm312_vm2, %v606_v40, %v627_v39 }
 0x30a   :  { %v581_v36 = vpop.permute.xlu0 %580 }
 0x30b   :  { %v610_v0 = vrot.slane %v581_v36, %v1300_v63 }
 0x30d   :  { %v629_v43 = vsel %vm314_vm5, %v610_v0, %v628_v41 }
 0x30e   :  { %v587_v33 = vpop.permute.xlu0 %586  ;;  %v584_v37 = vpop.permute.xlu1 %583 }
 0x30f   :  { %v614_v29 = vrot.slane %v584_v37, %v1300_v63  ;;  %v618_v44 = vrot.slane %v587_v33, %v1300_v63 }
 0x311   :  { %v630_v45 = vsel %vm316_vm6, %v614_v29, %v629_v43 }
 0x312   :  { %v593_v46 = vpop.permute.xlu0 %592  ;;  %v590_v50 = vpop.permute.xlu1 %589  ;;  %v631_v54 = vsel %vm318_vm10, %v618_v44, %v630_v45 }
 0x313   :  { %v626_v51 = vrot.slane %v593_v46, %v1300_v63  ;;  %v622_v53 = vrot.slane %v590_v50, %v1300_v63 }
 0x315   :  { %v632_v52 = vsel %vm320_vm11, %v622_v53, %v631_v54 }
 0x316   :  { %v633_v55 = vsel %vm322_vm12, %v626_v51, %v632_v52 }
 0x317   :  { %v635_v57 = vsel %vm325_vm13, %v633_v55, 0.0 }
 0x318   :  { %636 = vadd.xlane.f32.xlu0 %v635_v57 }
 0x319   :  { %942 = shalt.err (!%p939_p0)
}
 0x31a   :  { %s943_s12 = scalar_lea.hbm %s1384_s3, 128 }
 0x31b   :  { %p944_p1 = scmp.ne.s32.totalorder %s1384_s3, %s943_s12  ;;  %p947_p2 = scmp.lt.u32.totalorder %s943_s12, %s1384_s3 }
 0x31d   :  { %p949_p3 = pnand %p947_p2, %p944_p1 }
 0x31f   :  { %952 = shalt.err (!%p949_p3)
}
 0x320   :  { %754 = dma.vmem_to_hbm [thread:$0]  %s752_s28, 128, %s1384_s3, [#allocation4]  }
 0x321   :  { %s953_s18 = scalar_lea.vmem %s762_s8, 128  ;;  %p958_p5 = scmp.lt.s32.totalorder %s762_s8, %s762_s8 }
 0x322   :  { %p954_p4 = scmp.ne.s32.totalorder %s762_s8, %s953_s18  ;;  %p959_p6 = scmp.lt.s32.totalorder %s953_s18, %s953_s18 }
 0x324   :  { %p960_p7 = por %p959_p6, %p958_p5 }
 0x326   :  { %p961_p8 = pnand %p960_p7, %p954_p4 }
 0x328   :  { %964 = shalt.err (!%p961_p8)
}
 0x329   :  { %s965_s21 = scalar_lea.hbm %s1385_s4, 128 }
 0x32a   :  { %p966_p9 = scmp.ne.s32.totalorder %s1385_s4, %s965_s21  ;;  %p969_p10 = scmp.lt.u32.totalorder %s965_s21, %s1385_s4 }
 0x32c   :  { %p971_p11 = pnand %p969_p10, %p966_p9 }
 0x32e   :  { %974 = shalt.err (!%p971_p11)
}
 0x32f   :  { %764 = dma.vmem_to_hbm [thread:$0]  %s762_s8, 128, %s1385_s4, [#allocation10]   ;;  %vm741_vm1 = vcmp.eq.s32.totalorder %v1138_v13, 0  ;;  %vm743_vm2 = vcmask 15360  }
 0x344   :  { %v480_v63 = vpop.xlane.xlu1 %479 }
 0x345   :  { %863 = vrcp.f32 %v480_v63 }
 0x34f   :  { %v864_v58 = vpop.eup %863 }
 0x3a5   :  { %v637_v27 = vpop.xlane.xlu0 %636 }
 0x3a6   :  { %v639_v1 = vmul.f32 %v864_v58, %v637_v27 }
 0x3a8   :  { %v742_v6 = vsel %vm741_vm1, %v639_v1, %v1288_v16 }
 0x3a9   :  { %744 = vst.msk [vmem:[%s1386_s5] sm:$0xff] %vm743_vm2, %v742_v6 }
 0x3aa   :  { %979 = dma.done.wait [#allocation4], 128  }
 0x3ab   :  { %980 = vsyncadd [#allocation4], 4294967168 }
 0x3ac   :  { %981 = dma.done.wait [#allocation10], 128  }
 0x3ad   :  { %982 = vsyncadd [#allocation10], 4294967168 }
 0x3ae   :  { %775 = vsyncpa [#allocation3], 1 }
 0x3af   :  { %776 = vsyncpa [#allocation6], 1 }
 0x3b0   :  { %777 = vsyncpa [#allocation4], 1 }
 0x3b1   :  { %778 = vsyncpa [#allocation10], 1 }

</bundles_post_ra>
